<compile_context>
chip_gen: v7x
topology: tpu7x:2x2x1
jax: 0.10.0
libtpu: 0.0.40
codegen_flags: <defaults>
</compile_context>

<pallas_src>
import jax
import jax.numpy as jnp
from jax.experimental import pallas as pl
from jax.experimental.pallas import tpu as pltpu

INPUT_DIM = 784   # output_size in the PyTorch script
HIDDEN_DIM = 256
OUT_DIM = 1


def _round_up(x, m):
    return ((x + m - 1) // m) * m


def discriminator_kernel(x_ref, w1_ref, b1_ref, w2_ref, b2_ref, o_ref):
    # x:  (TM, 784)  native input dtype (f32 or bf16)
    # w1: (784, 256) compute dtype (bf16 or f32)
    # b1: (1, 256)   f32
    # w2: (1, 256)   f32  (row-vector form of the (256, 1) weight)
    # b2: (1, 1)     f32  scalar in SMEM
    # o:  (TM, 1)    f32
    # In-kernel cast to the matmul compute dtype (free VPU work, hidden under
    # the x DMA; avoids a standalone HBM convert pass in the wrapper).
    x = x_ref[...].astype(w1_ref.dtype)
    # Linear(784, 256): MXU matmul with f32 accumulation.
    h = jnp.dot(x, w1_ref[...], preferred_element_type=jnp.float32)
    h = jnp.maximum(h + b1_ref[...], 0.0)                       # bias + ReLU (f32, VPU)
    # Linear(256, 1): VPU multiply + XLU row-reduce instead of an N=1 matmul.
    z = jnp.sum(h * w2_ref[...], axis=-1, keepdims=True) + b2_ref[0, 0]
    o_ref[...] = jax.nn.sigmoid(z).astype(o_ref.dtype)          # EUP exp


def prepare_params(w1, b1, w2, b2, *, compute_dtype=jnp.bfloat16):
    """One-time parameter packing (hoisted out of the per-step forward call).

    w1:[784,256], b1:[1,256] or [256], w2:[256,1] or [256], b2:[1,1] or scalar.
    """
    w1_c = jnp.asarray(w1).astype(compute_dtype)                      # (784, 256)
    b1_r = jnp.asarray(b1).reshape(1, HIDDEN_DIM).astype(jnp.float32)  # (1, 256)
    w2_row = jnp.asarray(w2).reshape(1, HIDDEN_DIM).astype(jnp.float32)  # (1, 256)
    b2_s = jnp.asarray(b2).reshape(1, 1).astype(jnp.float32)           # (1, 1)
    return (w1_c, b1_r, w2_row, b2_s)


def discriminator_forward(x, packed_params, *, tile_m=1024,
                          vmem_limit_bytes=48 * 1024 * 1024):
    """x:[B,784] (f32 or bf16), packed_params from prepare_params() -> [B,1] f32."""
    w1_c, b1_r, w2_row, b2_s = packed_params
    B = x.shape[0]

    # Batch tile: as large as allowed (amortizes the ~0.35 us per-grid-step
    # cost), multiple of 8 (sublane), never larger than needed.
    tm = min(tile_m, _round_up(B, 8))

    # v7x has 2 TensorCores per chip; a grid of 1 "parallel" step leaves one
    # idle.  If the whole batch fits one tile but is big enough to split,
    # force >= 2 grid steps (>= 128 rows each for MXU alignment).
    if B > 128 and pl.cdiv(B, tm) < 2:
        tm = max(128, _round_up(pl.cdiv(B, 2), 128))

    grid = pl.cdiv(B, tm)   # partial last tile is masked -- no jnp.pad copy

    x_itemsize = jnp.dtype(x.dtype).itemsize
    w_itemsize = jnp.dtype(w1_c.dtype).itemsize
    cost = pl.CostEstimate(
        flops=2 * B * INPUT_DIM * HIDDEN_DIM + 2 * B * HIDDEN_DIM,
        transcendentals=B,
        bytes_accessed=(B * INPUT_DIM * x_itemsize            # x (dominant)
                        + INPUT_DIM * HIDDEN_DIM * w_itemsize  # w1 (resident)
                        + B * OUT_DIM * 4),                    # output
    )

    out = pl.pallas_call(
        discriminator_kernel,
        out_shape=jax.ShapeDtypeStruct((B, OUT_DIM), jnp.float32),
        grid=(grid,),
        in_specs=[
            pl.BlockSpec((tm, INPUT_DIM), lambda i: (i, 0)),           # x: batch-tiled
            pl.BlockSpec((INPUT_DIM, HIDDEN_DIM), lambda i: (0, 0)),   # w1: resident
            pl.BlockSpec((1, HIDDEN_DIM), lambda i: (0, 0)),           # b1: resident
            pl.BlockSpec((1, HIDDEN_DIM), lambda i: (0, 0)),           # w2 row: resident
            pl.BlockSpec(memory_space=pltpu.MemorySpace.SMEM),         # b2 scalar
        ],
        out_specs=pl.BlockSpec((tm, OUT_DIM), lambda i: (i, 0)),
        compiler_params=pltpu.CompilerParams(
            dimension_semantics=("parallel",),       # independent batch tiles
            vmem_limit_bytes=vmem_limit_bytes,       # ~12 MiB used at tm=1024
        ),
        cost_estimate=cost,
    )(x, w1_c, b1_r, w2_row, b2_s)

    return out


def init_params(key):
    """Deterministic init mimicking PyTorch nn.Linear default (uniform ±1/sqrt(fan_in))."""
    k1, k2, k3, k4 = jax.random.split(key, 4)
    lim1 = 1.0 / jnp.sqrt(jnp.float32(INPUT_DIM))
    lim2 = 1.0 / jnp.sqrt(jnp.float32(HIDDEN_DIM))
    # stored as (in, out) for the kernel; PyTorch stores (out, in)
    w1 = jax.random.uniform(k1, (INPUT_DIM, HIDDEN_DIM), jnp.float32, -lim1, lim1)
    b1 = jax.random.uniform(k2, (1, HIDDEN_DIM), jnp.float32, -lim1, lim1)
    w2 = jax.random.uniform(k3, (HIDDEN_DIM, OUT_DIM), jnp.float32, -lim2, lim2)
    b2 = jax.random.uniform(k4, (1, OUT_DIM), jnp.float32, -lim2, lim2)
    return w1, b1, w2, b2


def _reference(x, w1, b1, w2, b2):
    h = jnp.maximum(x @ w1 + b1, 0.0)
    return jax.nn.sigmoid(h @ w2 + b2)


if __name__ == "__main__":
    key = jax.random.PRNGKey(0)
    k_x, k_x2, k_p = jax.random.split(key, 3)

    w1, b1, w2, b2 = init_params(k_p)
    params_f32 = prepare_params(w1, b1, w2, b2, compute_dtype=jnp.float32)
    params_bf16 = prepare_params(w1, b1, w2, b2, compute_dtype=jnp.bfloat16)

    # --- small batch (single exact-fit tile) ---
    B = 8
    x = jax.random.normal(k_x, (B, INPUT_DIM), jnp.float32)
    y_ref = _reference(x, w1, b1, w2, b2)

    # exact (f32) path -- tight tolerance
    y_f32 = jax.block_until_ready(discriminator_forward(x, params_f32))
    assert y_f32.shape == (B, OUT_DIM)
    assert jnp.allclose(y_f32, y_ref, atol=1e-5, rtol=1e-5)

    # default bf16-weight path (x cast to bf16 inside the kernel) -- GAN-grade tol
    y_bf16 = jax.block_until_ready(discriminator_forward(x, params_bf16))
    assert y_bf16.shape == (B, OUT_DIM)
    assert jnp.allclose(y_bf16, y_ref, atol=3e-2, rtol=0)

    # --- batch that exercises the >=2-step grid and the masked partial tile ---
    B2 = 200   # -> tm=128, grid=2, last tile has 72 valid rows (no pad copy)
    x2 = jax.random.normal(k_x2, (B2, INPUT_DIM), jnp.float32)
    y2_ref = _reference(x2, w1, b1, w2, b2)
    y2 = jax.block_until_ready(discriminator_forward(x2, params_f32))
    assert y2.shape == (B2, OUT_DIM)
    assert jnp.allclose(y2, y2_ref, atol=1e-5, rtol=1e-5)

    print("KERNEL_OK")
</pallas_src>

<mosaic_0001>
module attributes {stable_mosaic.version = 11 : i64} {
  func.func @discriminator_kernel(%arg0: i32, %arg1: memref<8x784xf32, #tpu.memory_space<vmem>>, %arg2: memref<784x256xf32, #tpu.memory_space<vmem>>, %arg3: memref<1x256xf32, #tpu.memory_space<vmem>>, %arg4: memref<1x256xf32, #tpu.memory_space<vmem>>, %arg5: memref<1x1xf32, #tpu.memory_space<smem>>, %arg6: memref<8x1xf32, #tpu.memory_space<vmem>>) attributes {dimension_semantics = [#tpu.dimension_semantics<parallel>], iteration_bounds = array<i64: 1>, scalar_prefetch = 0 : i64, scratch_operands = 0 : i64, tpu.core_type = #tpu.core_type<tc>, window_params = [{transform_indices = @transform_0, window_bounds = array<i64: 8, 784>}, {pipeline_mode = #tpu.pipeline_mode<synchronous>, transform_indices = @transform_1, window_bounds = array<i64: 784, 256>}, {pipeline_mode = #tpu.pipeline_mode<synchronous>, transform_indices = @transform_2, window_bounds = array<i64: 1, 256>}, {pipeline_mode = #tpu.pipeline_mode<synchronous>, transform_indices = @transform_3, window_bounds = array<i64: 1, 256>}, {transform_indices = @transform_4, window_bounds = array<i64: 1, 1>}, {transform_indices = @transform_5, window_bounds = array<i64: 8, 1>}]} {
    %c0 = arith.constant 0 : index
    %c0_0 = arith.constant 0 : index
    %0 = vector.load %arg1[%c0, %c0_0] : memref<8x784xf32, #tpu.memory_space<vmem>>, vector<8x784xf32>
    %c0_1 = arith.constant 0 : index
    %c0_2 = arith.constant 0 : index
    %1 = vector.load %arg2[%c0_1, %c0_2] : memref<784x256xf32, #tpu.memory_space<vmem>>, vector<784x256xf32>
    %cst = arith.constant dense<0.000000e+00> : vector<8x256xf32>
    %2 = tpu.matmul %0, %1, %cst {dimension_numbers = #tpu.dot_dimension_numbers<[1], [0], [0], [1], [0, 0, 1, 1], [], []>} : vector<8x784xf32>, vector<784x256xf32>, vector<8x256xf32> -> vector<8x256xf32>
    %c0_3 = arith.constant 0 : index
    %c0_4 = arith.constant 0 : index
    %3 = vector.load %arg3[%c0_3, %c0_4] : memref<1x256xf32, #tpu.memory_space<vmem>>, vector<1x256xf32>
    %4 = vector.broadcast %3 : vector<1x256xf32> to vector<8x256xf32>
    %5 = arith.addf %2, %4 : vector<8x256xf32>
    %cst_5 = arith.constant 0.000000e+00 : f32
    %6 = vector.broadcast %cst_5 : f32 to vector<8x256xf32>
    %7 = arith.maximumf %5, %6 : vector<8x256xf32>
    %c0_6 = arith.constant 0 : index
    %c0_7 = arith.constant 0 : index
    %8 = vector.load %arg4[%c0_6, %c0_7] : memref<1x256xf32, #tpu.memory_space<vmem>>, vector<1x256xf32>
    %9 = vector.broadcast %8 : vector<1x256xf32> to vector<8x256xf32>
    %10 = arith.mulf %7, %9 : vector<8x256xf32>
    %cst_8 = arith.constant dense<0.000000e+00> : vector<8xf32>
    %11 = vector.multi_reduction <add>, %10, %cst_8 [1] : vector<8x256xf32> to vector<8xf32>
    %12 = vector.shape_cast %11 : vector<8xf32> to vector<8x1xf32>
    %c0_9 = arith.constant 0 : index
    %c0_10 = arith.constant 0 : index
    %13 = memref.load %arg5[%c0_9, %c0_10] : memref<1x1xf32, #tpu.memory_space<smem>>
    %14 = vector.broadcast %13 : f32 to vector<8x1xf32>
    %15 = arith.addf %12, %14 : vector<8x1xf32>
    %16 = arith.negf %15 : vector<8x1xf32>
    %17 = math.exp %16 : vector<8x1xf32>
    %cst_11 = arith.constant 1.000000e+00 : f32
    %18 = vector.broadcast %cst_11 : f32 to vector<8x1xf32>
    %19 = arith.addf %18, %17 : vector<8x1xf32>
    %20 = arith.divf %18, %19 : vector<8x1xf32>
    %c0_12 = arith.constant 0 : index
    %c0_13 = arith.constant 0 : index
    %21 = vector.load %arg6[%c0_12, %c0_13] : memref<8x1xf32, #tpu.memory_space<vmem>>, vector<8x1xf32>
    tpu.vector_store %arg6[%c0_12, %c0_13], %20 {strides = array<i32>} : memref<8x1xf32, #tpu.memory_space<vmem>>, vector<8x1xf32>,
    return
  }
  func.func @transform_0(%arg0: i32) -> (i32, i32) {
    %c0_i32 = arith.constant 0 : i32
    %c0_i32_0 = arith.constant 0 : i32
    return %arg0, %c0_i32 : i32, i32
  }
  func.func @transform_1(%arg0: i32) -> (i32, i32) {
    %c0_i32 = arith.constant 0 : i32
    %c0_i32_0 = arith.constant 0 : i32
    %c0_i32_1 = arith.constant 0 : i32
    return %c0_i32, %c0_i32_0 : i32, i32
  }
  func.func @transform_2(%arg0: i32) -> (i32, i32) {
    %c0_i32 = arith.constant 0 : i32
    %c0_i32_0 = arith.constant 0 : i32
    %c0_i32_1 = arith.constant 0 : i32
    return %c0_i32, %c0_i32_0 : i32, i32
  }
  func.func @transform_3(%arg0: i32) -> (i32, i32) {
    %c0_i32 = arith.constant 0 : i32
    %c0_i32_0 = arith.constant 0 : i32
    %c0_i32_1 = arith.constant 0 : i32
    return %c0_i32, %c0_i32_0 : i32, i32
  }
  func.func @transform_4(%arg0: i32) -> (i32, i32) {
    %c0_i32 = arith.constant 0 : i32
    %c0_i32_0 = arith.constant 0 : i32
    %c0_i32_1 = arith.constant 0 : i32
    return %c0_i32, %c0_i32_0 : i32, i32
  }
  func.func @transform_5(%arg0: i32) -> (i32, i32) {
    %c0_i32 = arith.constant 0 : i32
    %c0_i32_0 = arith.constant 0 : i32
    return %arg0, %c0_i32 : i32, i32
  }
}

</mosaic_0001>

<bundles_post_ra>
// kernel: tpu_custom_call.1
= control target key start
LH: loop header
LB: loop body
LE: loop exit
PB: predicated region body
PF: predicated region fallthrough
CT: control target
= control target key end

     0   :  { %11 = vsyncpa [#allocation4], 0  ;;  %s927_s0 = inlined_call_operand.hbm [shape: f32[8,784], index: 0, kind: input, shape index: {}]   ;;  %s928_s1 = inlined_call_operand.hbm [shape: f32[784,256], index: 1, kind: input, shape index: {}]   ;;  %s929_s2 = inlined_call_operand.vmem [shape: f32[1,256], index: 2, kind: input, shape index: {}]   ;;  %s930_s3 = inlined_call_operand.vmem [shape: f32[1,256], index: 3, kind: input, shape index: {}]   ;;  %s931_s4 = inlined_call_operand.<no memory space> [shape: f32[1,1], index: 4, kind: input, shape index: {}]   ;;  %s932_s5 = inlined_call_operand.vmem [shape: f32[8,1], index: 5, kind: output, shape index: {}]  }
   0x1   :  { %12 = vsyncpa [#allocation6], 0  ;;  %s849_s18 = smov [#allocation3]   ;;  %s850_s20 = smov [#allocation5]  }
   0x2   :  { %s19_s19 = sshll.u32 %s849_s18, 4  ;;  %s28_s21 = sshll.u32 %s850_s20, 4  ;;  %s20_s19 = int_to_ptr.vmem [resolvable:$true] %s19_s19  ;;  %s884_s21 = int_to_ptr.vmem [resolvable:$true] %s28_s21 }
   0x3   :  { %s801_s24 = scalar_lea.hbm %s927_s0, 896 }
   0x4   :  { %p802_p0 = scmp.ne.s32.totalorder %s927_s0, %s801_s24  ;;  %p805_p1 = scmp.lt.u32.totalorder %s801_s24, %s927_s0 }
   0x6   :  { %p807_p2 = pnand %p805_p1, %p802_p0 }
   0x8   :  { %810 = shalt.err (!%p807_p2)
}
   0x9   :  { %s811_s29 = scalar_lea.vmem %s20_s19, 896  ;;  %p816_p4 = scmp.lt.s32.totalorder %s20_s19, %s20_s19 }
   0xa   :  { %p812_p3 = scmp.ne.s32.totalorder %s20_s19, %s811_s29  ;;  %p817_p5 = scmp.lt.s32.totalorder %s811_s29, %s811_s29 }
   0xc   :  { %p818_p6 = por %p817_p5, %p816_p4 }
   0xe   :  { %p819_p7 = pnand %p818_p6, %p812_p3 }
  0x10   :  { %822 = shalt.err (!%p819_p7)
}
  0x11   :  { %22 = dma.hbm_to_vmem [thread:$0]  %s927_s0, 896, %s20_s19, [#allocation4]  }
  0x12   :  { %s823_s9 = scalar_lea.hbm %s928_s1, 25088 }
  0x13   :  { %p824_p8 = scmp.ne.s32.totalorder %s928_s1, %s823_s9  ;;  %p827_p9 = scmp.lt.u32.totalorder %s823_s9, %s928_s1 }
  0x15   :  { %p829_p10 = pnand %p827_p9, %p824_p8 }
  0x17   :  { %832 = shalt.err (!%p829_p10)
}
  0x18   :  { %s833_s14 = scalar_lea.vmem %s884_s21, 25088  ;;  %p838_p12 = scmp.lt.s32.totalorder %s884_s21, %s884_s21 }
  0x19   :  { %p834_p11 = scmp.ne.s32.totalorder %s884_s21, %s833_s14  ;;  %p839_p13 = scmp.lt.s32.totalorder %s833_s14, %s833_s14 }
  0x1b   :  { %p840_p0 = por %p839_p13, %p838_p12 }
  0x1d   :  { %p841_p1 = pnand %p840_p0, %p834_p11 }
  0x1f   :  { %844 = shalt.err (!%p841_p1)
}
  0x20   :  { %s851_s0 = smov 256   ;;  %s852_s15 = smov 16  }
  0x21   :  { %34 = dma.hbm_to_vmem [thread:$0]  %s928_s1, 25088, %s884_s21, [#allocation6], %s851_s0, %s851_s0, %s852_s15  }
  0x22   :  { %845 = dma.done.wait [#allocation4], 896  }
  0x23   :  { %846 = vsyncadd [#allocation4], 4294966400 }
  0x24   :  { %847 = dma.done.wait [#allocation6], 25088  }
  0x25   :  { %848 = vsyncadd [#allocation6], 4294942208  ;;  %v55_v0 = vld [vmem:[#allocation5 + $0x8] sm:$0xff]  ;;  %v57_v1 = vld [vmem:[#allocation5 + $0x18] sm:$0xff]  ;;  %vm262_vm0 = vcmask 130048   ;;  %vm578_vm1 = vcmask 7168  }
  0x26   :  { %v54_v2 = vld [vmem:[#allocation5] sm:$0xff]  ;;  %v588_v3 = vpack.c.bf16 %v57_v1, %v55_v0  ;;  %v56_v4 = vld [vmem:[#allocation5 + $0x10] sm:$0xff]  ;;  %v59_v5 = vld [vmem:[#allocation5 + $0x28] sm:$0xff] }
  0x27   :  { %v61_v6 = vld [vmem:[#allocation5 + $0x38] sm:$0xff]  ;;  %v590_v7 = vpack.c.bf16 %v56_v4, %v54_v2  ;;  %v58_v9 = vld [vmem:[#allocation5 + $0x20] sm:$0xff]  ;;  %v60_v10 = vld [vmem:[#allocation5 + $0x30] sm:$0xff] }
  0x28   :  { %v592_v8 = vpack.c.bf16 %v61_v6, %v59_v5  ;;  %v63_v11 = vld [vmem:[#allocation5 + $0x48] sm:$0xff]  ;;  %589 = vmatprep.subr.bf16.mxu1 %v588_v3  ;;  %v65_v12 = vld [vmem:[#allocation5 + $0x58] sm:$0xff]  ;;  %v594_v13 = vpack.c.bf16 %v60_v10, %v58_v9  ;;  %v62_v15 = vld [vmem:[#allocation5 + $0x40] sm:$0xff] }
  0x29   :  { %591 = vmatpush1.bf16.msra.mxu1 %v590_v7  ;;  %v596_v14 = vpack.c.bf16 %v65_v12, %v63_v11  ;;  %v64_v16 = vld [vmem:[#allocation5 + $0x50] sm:$0xff]  ;;  %v67_v17 = vld [vmem:[#allocation5 + $0x68] sm:$0xff]  ;;  %v69_v18 = vld [vmem:[#allocation5 + $0x78] sm:$0xff] }
  0x2a   :  { %593 = vmatprep.subr.bf16.mxu1 %v592_v8  ;;  %v598_v19 = vpack.c.bf16 %v64_v16, %v62_v15  ;;  %v600_v20 = vpack.c.bf16 %v69_v18, %v67_v17  ;;  %v66_v21 = vld [vmem:[#allocation5 + $0x60] sm:$0xff]  ;;  %v68_v22 = vld [vmem:[#allocation5 + $0x70] sm:$0xff]  ;;  %v71_v23 = vld [vmem:[#allocation5 + $0x88] sm:$0xff] }
  0x2b   :  { %v73_v24 = vld [vmem:[#allocation5 + $0x98] sm:$0xff]  ;;  %v602_v25 = vpack.c.bf16 %v68_v22, %v66_v21  ;;  %v70_v27 = vld [vmem:[#allocation5 + $0x80] sm:$0xff]  ;;  %v72_v28 = vld [vmem:[#allocation5 + $0x90] sm:$0xff] }
  0x2c   :  { %v604_v26 = vpack.c.bf16 %v73_v24, %v71_v23  ;;  %v75_v29 = vld [vmem:[#allocation5 + $0xa8] sm:$0xff]  ;;  %v77_v30 = vld [vmem:[#allocation5 + $0xb8] sm:$0xff]  ;;  %v606_v31 = vpack.c.bf16 %v72_v28, %v70_v27  ;;  %v74_v32 = vld [vmem:[#allocation5 + $0xa0] sm:$0xff] }
  0x2d   :  { %595 = vmatpush1.bf16.msra.mxu1 %v594_v13  ;;  %v76_v33 = vld [vmem:[#allocation5 + $0xb0] sm:$0xff]  ;;  %v608_v34 = vpack.c.bf16 %v77_v30, %v75_v29  ;;  %v79_v35 = vld [vmem:[#allocation5 + $0xc8] sm:$0xff]  ;;  %v185_v37 = vld [vmem:[#allocation5 + $0x418] sm:$0xff] }
  0x2e   :  { %597 = vmatprep.subr.bf16.mxu1 %v596_v14  ;;  %v183_v36 = vld [vmem:[#allocation5 + $0x408] sm:$0xff]  ;;  %v81_v38 = vld [vmem:[#allocation5 + $0xd8] sm:$0xff]  ;;  %v182_v40 = vld [vmem:[#allocation5 + $0x400] sm:$0xff]  ;;  %v610_v43 = vpack.c.bf16 %v76_v33, %v74_v32 }
  0x2f   :  { %v716_v39 = vpack.c.bf16 %v185_v37, %v183_v36  ;;  %v184_v41 = vld [vmem:[#allocation5 + $0x410] sm:$0xff]  ;;  %v187_v44 = vld [vmem:[#allocation5 + $0x428] sm:$0xff]  ;;  %v189_v45 = vld [vmem:[#allocation5 + $0x438] sm:$0xff]  ;;  %v612_v47 = vpack.c.bf16 %v81_v38, %v79_v35 }
  0x30   :  { %v718_v42 = vpack.c.bf16 %v184_v41, %v182_v40  ;;  %v186_v46 = vld [vmem:[#allocation5 + $0x420] sm:$0xff]  ;;  %v80_v49 = vld [vmem:[#allocation5 + $0xd0] sm:$0xff]  ;;  %v720_v50 = vpack.c.bf16 %v189_v45, %v187_v44  ;;  %v83_v52 = vld [vmem:[#allocation5 + $0xe8] sm:$0xff] }
  0x31   :  { %599 = vmatpush1.bf16.msra.mxu1 %v598_v19  ;;  %717 = vmatprep.subr.bf16.mxu0 %v716_v39  ;;  %v78_v48 = vld [vmem:[#allocation5 + $0xc0] sm:$0xff]  ;;  %v188_v51 = vld [vmem:[#allocation5 + $0x430] sm:$0xff]  ;;  %v85_v53 = vld [vmem:[#allocation5 + $0xf8] sm:$0xff] }
  0x32   :  { %601 = vmatprep.subr.bf16.mxu1 %v600_v20  ;;  %719 = vmatpush1.bf16.msra.mxu0 %v718_v42  ;;  %v722_v54 = vpack.c.bf16 %v188_v51, %v186_v46  ;;  %v191_v55 = vld [vmem:[#allocation5 + $0x448] sm:$0xff]  ;;  %v193_v56 = vld [vmem:[#allocation5 + $0x458] sm:$0xff]  ;;  %v190_v57 = vld [vmem:[#allocation5 + $0x440] sm:$0xff]  ;;  %v614_v59 = vpack.c.bf16 %v80_v49, %v78_v48  ;;  %v616_v0 = vpack.c.bf16 %v85_v53, %v83_v52 }
  0x33   :  { %721 = vmatprep.subr.bf16.mxu0 %v720_v50  ;;  %v192_v58 = vld [vmem:[#allocation5 + $0x450] sm:$0xff]  ;;  %v82_v60 = vld [vmem:[#allocation5 + $0xe0] sm:$0xff]  ;;  %v87_v62 = vld [vmem:[#allocation5 + $0x108] sm:$0xff]  ;;  %v724_v63 = vpack.c.bf16 %v193_v56, %v191_v55 }
  0x34   :  { %v84_v61 = vld [vmem:[#allocation5 + $0xf0] sm:$0xff]  ;;  %v89_v1 = vld [vmem:[#allocation5 + $0x118] sm:$0xff]  ;;  %v726_v2 = vpack.c.bf16 %v192_v58, %v190_v57  ;;  %v195_v3 = vld [vmem:[#allocation5 + $0x468] sm:$0xff] }
  0x35   :  { %603 = vmatpush1.bf16.msra.mxu1 %v602_v25  ;;  %v197_v4 = vld [vmem:[#allocation5 + $0x478] sm:$0xff]  ;;  %v194_v6 = vld [vmem:[#allocation5 + $0x460] sm:$0xff]  ;;  %v196_v7 = vld [vmem:[#allocation5 + $0x470] sm:$0xff]  ;;  %v618_v9 = vpack.c.bf16 %v84_v61, %v82_v60  ;;  %v620_v12 = vpack.c.bf16 %v89_v1, %v87_v62 }
  0x36   :  { %605 = vmatprep.subr.bf16.mxu1 %v604_v26  ;;  %723 = vmatpush1.bf16.msra.mxu0 %v722_v54  ;;  %v728_v5 = vpack.c.bf16 %v197_v4, %v195_v3  ;;  %v48_v8 = vld [vmem:[#allocation3 + $0x8] sm:$0xff]  ;;  %v86_v10 = vld [vmem:[#allocation5 + $0x100] sm:$0xff]  ;;  %v199_v11 = vld [vmem:[#allocation5 + $0x488] sm:$0xff]  ;;  %v730_v15 = vpack.c.bf16 %v196_v7, %v194_v6 }
  0x37   :  { %725 = vmatprep.subr.bf16.mxu0 %v724_v63  ;;  %330 = vmatprep.mubr.f32.mxu1 %v48_v8  ;;  %v88_v13 = vld [vmem:[#allocation5 + $0x110] sm:$0xff]  ;;  %v91_v14 = vld [vmem:[#allocation5 + $0x128] sm:$0xff]  ;;  %v201_v16 = vld [vmem:[#allocation5 + $0x498] sm:$0xff] }
  0x38   :  { %v93_v17 = vld [vmem:[#allocation5 + $0x138] sm:$0xff]  ;;  %v732_v18 = vpack.c.bf16 %v201_v16, %v199_v11  ;;  %v198_v19 = vld [vmem:[#allocation5 + $0x480] sm:$0xff]  ;;  %v200_v20 = vld [vmem:[#allocation5 + $0x490] sm:$0xff]  ;;  %v622_v23 = vpack.c.bf16 %v88_v13, %v86_v10 }
  0x39   :  { %607 = vmatpush1.bf16.msra.mxu1 %v606_v31  ;;  %v203_v21 = vld [vmem:[#allocation5 + $0x4a8] sm:$0xff]  ;;  %v205_v22 = vld [vmem:[#allocation5 + $0x4b8] sm:$0xff]  ;;  %v624_v24 = vpack.c.bf16 %v93_v17, %v91_v14  ;;  %v90_v25 = vld [vmem:[#allocation5 + $0x120] sm:$0xff]  ;;  %v734_v28 = vpack.c.bf16 %v200_v20, %v198_v19 }
  0x3a   :  { %609 = vmatprep.subr.bf16.mxu1 %v608_v34  ;;  %727 = vmatpush1.bf16.msra.mxu0 %v726_v2  ;;  %v92_v26 = vld [vmem:[#allocation5 + $0x130] sm:$0xff]  ;;  %v95_v27 = vld [vmem:[#allocation5 + $0x148] sm:$0xff]  ;;  %v97_v29 = vld [vmem:[#allocation5 + $0x158] sm:$0xff]  ;;  %v736_v30 = vpack.c.bf16 %v205_v22, %v203_v21 }
  0x3b   :  { %729 = vmatprep.subr.bf16.mxu0 %v728_v5  ;;  %v202_v31 = vld [vmem:[#allocation5 + $0x4a0] sm:$0xff]  ;;  %v204_v32 = vld [vmem:[#allocation5 + $0x4b0] sm:$0xff]  ;;  %v207_v33 = vld [vmem:[#allocation5 + $0x4c8] sm:$0xff]  ;;  %v626_v35 = vpack.c.bf16 %v92_v26, %v90_v25  ;;  %v628_v36 = vpack.c.bf16 %v97_v29, %v95_v27 }
  0x3c   :  { %v209_v34 = vld [vmem:[#allocation5 + $0x4d8] sm:$0xff]  ;;  %v94_v37 = vld [vmem:[#allocation5 + $0x140] sm:$0xff]  ;;  %v96_v38 = vld [vmem:[#allocation5 + $0x150] sm:$0xff]  ;;  %v738_v40 = vpack.c.bf16 %v204_v32, %v202_v31 }
  0x3d   :  { %611 = vmatpush1.bf16.msra.mxu1 %v610_v43  ;;  %v99_v39 = vld [vmem:[#allocation5 + $0x168] sm:$0xff]  ;;  %v101_v41 = vld [vmem:[#allocation5 + $0x178] sm:$0xff]  ;;  %v740_v42 = vpack.c.bf16 %v209_v34, %v207_v33  ;;  %v206_v43 = vld [vmem:[#allocation5 + $0x4c0] sm:$0xff] }
  0x3e   :  { %613 = vmatprep.subr.bf16.mxu1 %v612_v47  ;;  %731 = vmatpush1.bf16.msra.mxu0 %v730_v15  ;;  %v208_v44 = vld [vmem:[#allocation5 + $0x4d0] sm:$0xff]  ;;  %v211_v45 = vld [vmem:[#allocation5 + $0x4e8] sm:$0xff]  ;;  %v213_v46 = vld [vmem:[#allocation5 + $0x4f8] sm:$0xff]  ;;  %v630_v47 = vpack.c.bf16 %v96_v38, %v94_v37  ;;  %v632_v48 = vpack.c.bf16 %v101_v41, %v99_v39 }
  0x3f   :  { %733 = vmatprep.subr.bf16.mxu0 %v732_v18  ;;  %v98_v49 = vld [vmem:[#allocation5 + $0x160] sm:$0xff]  ;;  %v100_v50 = vld [vmem:[#allocation5 + $0x170] sm:$0xff]  ;;  %v103_v51 = vld [vmem:[#allocation5 + $0x188] sm:$0xff]  ;;  %v742_v52 = vpack.c.bf16 %v208_v44, %v206_v43  ;;  %v744_v54 = vpack.c.bf16 %v213_v46, %v211_v45 }
  0x40   :  { %v105_v53 = vld [vmem:[#allocation5 + $0x198] sm:$0xff]  ;;  %v210_v55 = vld [vmem:[#allocation5 + $0x4e0] sm:$0xff]  ;;  %v212_v56 = vld [vmem:[#allocation5 + $0x4f0] sm:$0xff] }
  0x41   :  { %615 = vmatpush1.bf16.msra.mxu1 %v614_v59  ;;  %v215_v57 = vld [vmem:[#allocation5 + $0x508] sm:$0xff]  ;;  %v217_v58 = vld [vmem:[#allocation5 + $0x518] sm:$0xff]  ;;  %v634_v59 = vpack.c.bf16 %v100_v50, %v98_v49  ;;  %v636_v60 = vpack.c.bf16 %v105_v53, %v103_v51  ;;  %v102_v61 = vld [vmem:[#allocation5 + $0x180] sm:$0xff] }
  0x42   :  { %617 = vmatprep.subr.bf16.mxu1 %v616_v0  ;;  %735 = vmatpush1.bf16.msra.mxu0 %v734_v28  ;;  %v104_v62 = vld [vmem:[#allocation5 + $0x190] sm:$0xff]  ;;  %v107_v63 = vld [vmem:[#allocation5 + $0x1a8] sm:$0xff]  ;;  %v746_v0 = vpack.c.bf16 %v212_v56, %v210_v55  ;;  %v109_v1 = vld [vmem:[#allocation5 + $0x1b8] sm:$0xff]  ;;  %v748_v2 = vpack.c.bf16 %v217_v58, %v215_v57 }
  0x43   :  { %737 = vmatprep.subr.bf16.mxu0 %v736_v30  ;;  %v214_v3 = vld [vmem:[#allocation5 + $0x500] sm:$0xff]  ;;  %v216_v4 = vld [vmem:[#allocation5 + $0x510] sm:$0xff]  ;;  %v219_v5 = vld [vmem:[#allocation5 + $0x528] sm:$0xff]  ;;  %v638_v7 = vpack.c.bf16 %v104_v62, %v102_v61  ;;  %v640_v8 = vpack.c.bf16 %v109_v1, %v107_v63 }
  0x44   :  { %v221_v6 = vld [vmem:[#allocation5 + $0x538] sm:$0xff]  ;;  %v108_v10 = vld [vmem:[#allocation5 + $0x1b0] sm:$0xff]  ;;  %v111_v11 = vld [vmem:[#allocation5 + $0x1c8] sm:$0xff] }
  0x45   :  { %619 = vmatpush1.bf16.msra.mxu1 %v618_v9  ;;  %v106_v9 = vld [vmem:[#allocation5 + $0x1a0] sm:$0xff]  ;;  %v113_v13 = vld [vmem:[#allocation5 + $0x1d8] sm:$0xff]  ;;  %v752_v14 = vpack.c.bf16 %v221_v6, %v219_v5  ;;  %v220_v16 = vld [vmem:[#allocation5 + $0x530] sm:$0xff] }
  0x46   :  { %621 = vmatprep.subr.bf16.mxu1 %v620_v12  ;;  %739 = vmatpush1.bf16.msra.mxu0 %v738_v40  ;;  %v750_v12 = vpack.c.bf16 %v216_v4, %v214_v3  ;;  %v218_v15 = vld [vmem:[#allocation5 + $0x520] sm:$0xff]  ;;  %v223_v17 = vld [vmem:[#allocation5 + $0x548] sm:$0xff]  ;;  %v225_v18 = vld [vmem:[#allocation5 + $0x558] sm:$0xff]  ;;  %v642_v19 = vpack.c.bf16 %v108_v10, %v106_v9  ;;  %v644_v20 = vpack.c.bf16 %v113_v13, %v111_v11 }
  0x47   :  { %741 = vmatprep.subr.bf16.mxu0 %v740_v42  ;;  %v110_v21 = vld [vmem:[#allocation5 + $0x1c0] sm:$0xff]  ;;  %v112_v22 = vld [vmem:[#allocation5 + $0x1d0] sm:$0xff]  ;;  %v117_v25 = vld [vmem:[#allocation5 + $0x1f8] sm:$0xff]  ;;  %v756_v26 = vpack.c.bf16 %v225_v18, %v223_v17 }
  0x48   :  { %v222_v27 = vld [vmem:[#allocation5 + $0x540] sm:$0xff]  ;;  %v224_v28 = vld [vmem:[#allocation5 + $0x550] sm:$0xff]  ;;  %v227_v29 = vld [vmem:[#allocation5 + $0x568] sm:$0xff]  ;;  %v646_v31 = vpack.c.bf16 %v112_v22, %v110_v21 }
  0x49   :  { %623 = vmatpush1.bf16.msra.mxu1 %v622_v23  ;;  %v115_v23 = vld [vmem:[#allocation5 + $0x1e8] sm:$0xff]  ;;  %v229_v30 = vld [vmem:[#allocation5 + $0x578] sm:$0xff]  ;;  %v114_v33 = vld [vmem:[#allocation5 + $0x1e0] sm:$0xff] }
  0x4a   :  { %625 = vmatprep.subr.bf16.mxu1 %v624_v24  ;;  %743 = vmatpush1.bf16.msra.mxu0 %v742_v52  ;;  %v754_v24 = vpack.c.bf16 %v220_v16, %v218_v15  ;;  %v648_v32 = vpack.c.bf16 %v117_v25, %v115_v23  ;;  %v116_v34 = vld [vmem:[#allocation5 + $0x1f0] sm:$0xff]  ;;  %v121_v37 = vld [vmem:[#allocation5 + $0x218] sm:$0xff]  ;;  %v760_v38 = vpack.c.bf16 %v229_v30, %v227_v29  ;;  %v226_v39 = vld [vmem:[#allocation5 + $0x560] sm:$0xff] }
  0x4b   :  { %745 = vmatprep.subr.bf16.mxu0 %v744_v54  ;;  %v228_v40 = vld [vmem:[#allocation5 + $0x570] sm:$0xff]  ;;  %v231_v41 = vld [vmem:[#allocation5 + $0x588] sm:$0xff]  ;;  %v233_v42 = vld [vmem:[#allocation5 + $0x598] sm:$0xff]  ;;  %v650_v43 = vpack.c.bf16 %v116_v34, %v114_v33 }
  0x4c   :  { %v52_v44 = vld [vmem:[#allocation3 + $0x28] sm:$0xff]  ;;  %v118_v46 = vld [vmem:[#allocation5 + $0x200] sm:$0xff]  ;;  %v762_v49 = vpack.c.bf16 %v228_v40, %v226_v39  ;;  %v125_v50 = vld [vmem:[#allocation5 + $0x238] sm:$0xff]  ;;  %v764_v51 = vpack.c.bf16 %v233_v42, %v231_v41 }
  0x4d   :  { %627 = vmatpush1.bf16.msra.mxu1 %v626_v35  ;;  %v119_v35 = vld [vmem:[#allocation5 + $0x208] sm:$0xff]  ;;  %v230_v52 = vld [vmem:[#allocation5 + $0x580] sm:$0xff]  ;;  %v232_v53 = vld [vmem:[#allocation5 + $0x590] sm:$0xff]  ;;  %472 = vmatprep.mubr.f32.mxu0 %v52_v44 }
  0x4e   :  { %629 = vmatprep.subr.bf16.mxu1 %v628_v36  ;;  %747 = vmatpush1.bf16.msra.mxu0 %v746_v0  ;;  %v758_v36 = vpack.c.bf16 %v224_v28, %v222_v27  ;;  %v652_v45 = vpack.c.bf16 %v121_v37, %v119_v35  ;;  %v235_v54 = vld [vmem:[#allocation5 + $0x5a8] sm:$0xff]  ;;  %v237_v55 = vld [vmem:[#allocation5 + $0x5b8] sm:$0xff]  ;;  %v766_v62 = vpack.c.bf16 %v232_v53, %v230_v52  ;;  %v234_v1 = vld [vmem:[#allocation5 + $0x5a0] sm:$0xff] }
  0x4f   :  { %749 = vmatprep.subr.bf16.mxu0 %v748_v2  ;;  %v47_v56 = vld [vmem:[#allocation3] sm:$0xff]  ;;  %v129_v63 = vld [vmem:[#allocation5 + $0x258] sm:$0xff]  ;;  %v768_v0 = vpack.c.bf16 %v237_v55, %v235_v54  ;;  %v236_v2 = vld [vmem:[#allocation5 + $0x5b0] sm:$0xff]  ;;  %v853_v54 = vmov 0.0  }
  0x50   :  { %v127_v61 = vld [vmem:[#allocation5 + $0x248] sm:$0xff]  ;;  %v241_v4 = vld [vmem:[#allocation5 + $0x5d8] sm:$0xff]  ;;  %v50_v5 = vld [vmem:[#allocation3 + $0x18] sm:$0xff]  ;;  %v770_v11 = vpack.c.bf16 %v236_v2, %v234_v1 }
  0x51   :  { %631 = vmatpush1.bf16.msra.mxu1 %v630_v47  ;;  %v120_v47 = vld [vmem:[#allocation5 + $0x210] sm:$0xff]  ;;  %v239_v3 = vld [vmem:[#allocation5 + $0x5c8] sm:$0xff]  ;;  %v245_v17 = vld [vmem:[#allocation5 + $0x5f8] sm:$0xff] }
  0x52   :  { %633 = vmatprep.subr.bf16.mxu1 %v632_v48  ;;  %751 = vmatpush1.bf16.msra.mxu0 %v750_v12  ;;  %v123_v48 = vld [vmem:[#allocation5 + $0x228] sm:$0xff]  ;;  %v654_v57 = vpack.c.bf16 %v120_v47, %v118_v46  ;;  %v128_v9 = vld [vmem:[#allocation5 + $0x250] sm:$0xff]  ;;  %v133_v12 = vld [vmem:[#allocation5 + $0x278] sm:$0xff]  ;;  %v772_v13 = vpack.c.bf16 %v241_v4, %v239_v3 }
  0x53   :  { %753 = vmatprep.subr.bf16.mxu0 %v752_v14  ;;  %v656_v58 = vpack.c.bf16 %v125_v50, %v123_v48  ;;  %v131_v10 = vld [vmem:[#allocation5 + $0x268] sm:$0xff]  ;;  %v238_v14 = vld [vmem:[#allocation5 + $0x5c0] sm:$0xff]  ;;  %v240_v15 = vld [vmem:[#allocation5 + $0x5d0] sm:$0xff] }
  0x54   :  { %v243_v16 = vld [vmem:[#allocation5 + $0x5e8] sm:$0xff]  ;;  %v132_v21 = vld [vmem:[#allocation5 + $0x270] sm:$0xff]  ;;  %v774_v23 = vpack.c.bf16 %v240_v15, %v238_v14  ;;  %v249_v29 = vld [vmem:[#allocation5 + $0x618] sm:$0xff] }
  0x55   :  { %635 = vmatpush1.bf16.msra.mxu1 %v634_v59  ;;  %v122_v59 = vld [vmem:[#allocation5 + $0x220] sm:$0xff]  ;;  %v135_v22 = vld [vmem:[#allocation5 + $0x288] sm:$0xff]  ;;  %v776_v25 = vpack.c.bf16 %v245_v17, %v243_v16  ;;  %v244_v27 = vld [vmem:[#allocation5 + $0x5f0] sm:$0xff] }
  0x56   :  { %637 = vmatprep.subr.bf16.mxu1 %v636_v60  ;;  %755 = vmatpush1.bf16.msra.mxu0 %v754_v24  ;;  %v124_v60 = vld [vmem:[#allocation5 + $0x230] sm:$0xff]  ;;  %v137_v24 = vld [vmem:[#allocation5 + $0x298] sm:$0xff]  ;;  %v247_v28 = vld [vmem:[#allocation5 + $0x608] sm:$0xff] }
  0x57   :  { %757 = vmatprep.subr.bf16.mxu0 %v756_v26  ;;  %v658_v6 = vpack.c.bf16 %v124_v60, %v122_v59  ;;  %v242_v26 = vld [vmem:[#allocation5 + $0x5e0] sm:$0xff]  ;;  %v136_v33 = vld [vmem:[#allocation5 + $0x290] sm:$0xff]  ;;  %v139_v34 = vld [vmem:[#allocation5 + $0x2a8] sm:$0xff]  ;;  %v780_v37 = vpack.c.bf16 %v249_v29, %v247_v28 }
  0x58   :  { %v778_v35 = vpack.c.bf16 %v244_v27, %v242_v26  ;;  %v248_v39 = vld [vmem:[#allocation5 + $0x610] sm:$0xff]  ;;  %v138_v42 = vld [vmem:[#allocation5 + $0x2a0] sm:$0xff]  ;;  %v51_v44 = vld [vmem:[#allocation3 + $0x20] sm:$0xff] }
  0x59   :  { %639 = vmatpush1.bf16.msra.mxu1 %v638_v7  ;;  %v660_v7 = vpack.c.bf16 %v129_v63, %v127_v61  ;;  %v143_v46 = vld [vmem:[#allocation5 + $0x2c8] sm:$0xff]  ;;  %v145_v47 = vld [vmem:[#allocation5 + $0x2d8] sm:$0xff]  ;;  %v142_v50 = vld [vmem:[#allocation5 + $0x2c0] sm:$0xff] }
  0x5a   :  { %641 = vmatprep.subr.bf16.mxu1 %v640_v8  ;;  %759 = vmatpush1.bf16.msra.mxu0 %v758_v36  ;;  %v126_v8 = vld [vmem:[#allocation5 + $0x240] sm:$0xff]  ;;  %v141_v36 = vld [vmem:[#allocation5 + $0x2b8] sm:$0xff]  ;;  %v147_v52 = vld [vmem:[#allocation5 + $0x2e8] sm:$0xff] }
  0x5b   :  { %761 = vmatprep.subr.bf16.mxu0 %v760_v38  ;;  %v662_v18 = vpack.c.bf16 %v128_v9, %v126_v8  ;;  %v246_v38 = vld [vmem:[#allocation5 + $0x600] sm:$0xff]  ;;  %v672_v41 = vpack.c.bf16 %v141_v36, %v139_v34  ;;  %v149_v53 = vld [vmem:[#allocation5 + $0x2f8] sm:$0xff]  ;;  %v151_v60 = vld [vmem:[#allocation5 + $0x308] sm:$0xff] }
  0x5c   :  { %v53_v59 = vld [vmem:[#allocation3 + $0x30] sm:$0xff]  ;;  %v152_v1 = vld [vmem:[#allocation5 + $0x310] sm:$0xff]  ;;  %v155_v2 = vld [vmem:[#allocation5 + $0x328] sm:$0xff] }
  0x5d   :  { %643 = vmatpush1.bf16.msra.mxu1 %v642_v19  ;;  %v664_v19 = vpack.c.bf16 %v133_v12, %v131_v10  ;;  %v153_v61 = vld [vmem:[#allocation5 + $0x318] sm:$0xff]  ;;  %v159_v8 = vld [vmem:[#allocation5 + $0x348] sm:$0xff]  ;;  %v158_v12 = vld [vmem:[#allocation5 + $0x340] sm:$0xff] }
  0x5e   :  { %645 = vmatprep.subr.bf16.mxu1 %v644_v20  ;;  %763 = vmatpush1.bf16.msra.mxu0 %v762_v49  ;;  %v130_v20 = vld [vmem:[#allocation5 + $0x260] sm:$0xff]  ;;  %v676_v49 = vpack.c.bf16 %v145_v47, %v143_v46  ;;  %v684_v63 = vpack.c.bf16 %v153_v61, %v151_v60  ;;  %v157_v3 = vld [vmem:[#allocation5 + $0x338] sm:$0xff]  ;;  %v163_v14 = vld [vmem:[#allocation5 + $0x368] sm:$0xff] }
  0x5f   :  { %765 = vmatprep.subr.bf16.mxu0 %v764_v51  ;;  %v666_v30 = vpack.c.bf16 %v132_v21, %v130_v20  ;;  %v144_v51 = vld [vmem:[#allocation5 + $0x2d0] sm:$0xff]  ;;  %v161_v9 = vld [vmem:[#allocation5 + $0x358] sm:$0xff]  ;;  %v167_v20 = vld [vmem:[#allocation5 + $0x388] sm:$0xff] }
  0x60   :  { %v678_v55 = vpack.c.bf16 %v144_v51, %v142_v50  ;;  %v165_v15 = vld [vmem:[#allocation5 + $0x378] sm:$0xff]  ;;  %v171_v26 = vld [vmem:[#allocation5 + $0x3a8] sm:$0xff]  ;;  %v174_v36 = vld [vmem:[#allocation5 + $0x3c0] sm:$0xff] }
  0x61   :  { %647 = vmatpush1.bf16.msra.mxu1 %v646_v31  ;;  %v668_v31 = vpack.c.bf16 %v137_v24, %v135_v22  ;;  %v696_v17 = vpack.c.bf16 %v165_v15, %v163_v14  ;;  %v169_v21 = vld [vmem:[#allocation5 + $0x398] sm:$0xff]  ;;  %v166_v24 = vld [vmem:[#allocation5 + $0x380] sm:$0xff]  ;;  %v250_v51 = vld [vmem:[%s929_s2] sm:$0x3] }
  0x62   :  { %649 = vmatprep.subr.bf16.mxu1 %v648_v32  ;;  %767 = vmatpush1.bf16.msra.mxu0 %v766_v62  ;;  %v134_v32 = vld [vmem:[#allocation5 + $0x280] sm:$0xff]  ;;  %v173_v27 = vld [vmem:[#allocation5 + $0x3b8] sm:$0xff] }
  0x63   :  { %769 = vmatprep.subr.bf16.mxu0 %v768_v0  ;;  %v670_v40 = vpack.c.bf16 %v136_v33, %v134_v32  ;;  %v150_v0 = vld [vmem:[#allocation5 + $0x300] sm:$0xff]  ;;  %v704_v29 = vpack.c.bf16 %v173_v27, %v171_v26  ;;  %v175_v32 = vld [vmem:[#allocation5 + $0x3c8] sm:$0xff]  ;;  %v177_v33 = vld [vmem:[#allocation5 + $0x3d8] sm:$0xff] }
  0x64   :  { %v686_v4 = vpack.c.bf16 %v152_v1, %v150_v0 }
  0x65   :  { %651 = vmatpush1.bf16.msra.mxu1 %v650_v43  ;;  %v140_v43 = vld [vmem:[#allocation5 + $0x2b0] sm:$0xff] }
  0x66   :  { %653 = vmatprep.subr.bf16.mxu1 %v652_v45  ;;  %771 = vmatpush1.bf16.msra.mxu0 %v770_v11  ;;  %v782_v45 = vpack.c.bf16 %v248_v39, %v246_v38  ;;  %v674_v48 = vpack.c.bf16 %v140_v43, %v138_v42  ;;  %v692_v11 = vpack.c.bf16 %v161_v9, %v159_v8  ;;  %v179_v38 = vld [vmem:[#allocation5 + $0x3e8] sm:$0xff]  ;;  %v181_v39 = vld [vmem:[#allocation5 + $0x3f8] sm:$0xff]  ;;  %v178_v42 = vld [vmem:[#allocation5 + $0x3e0] sm:$0xff] }
  0x67   :  { %773 = vmatprep.subr.bf16.mxu0 %v772_v13  ;;  %v160_v13 = vld [vmem:[#allocation5 + $0x350] sm:$0xff] }
  0x68   :  { %331 = vmatmul.mubr.f32.vlgmr.msra.gmra.mrb[0].mxu1 %v47_v56  ;;  %v680_v56 = vpack.c.bf16 %v149_v53, %v147_v52  ;;  %v694_v16 = vpack.c.bf16 %v160_v13, %v158_v12  ;;  %v180_v43 = vld [vmem:[#allocation5 + $0x3f0] sm:$0xff] }
  0x69   :  { %655 = vmatpush1.bf16.msra.mxu1 %v654_v57  ;;  %401 = vmatprep.mubr.f32.mxu1 %v50_v5  ;;  %v146_v57 = vld [vmem:[#allocation5 + $0x2e0] sm:$0xff]  ;;  %v688_v5 = vpack.c.bf16 %v157_v3, %v155_v2 }
  0x6a   :  { %657 = vmatprep.subr.bf16.mxu1 %v656_v58  ;;  %775 = vmatpush1.bf16.msra.mxu0 %v774_v23  ;;  %v148_v58 = vld [vmem:[#allocation5 + $0x2f0] sm:$0xff]  ;;  %v700_v23 = vpack.c.bf16 %v169_v21, %v167_v20 }
  0x6b   :  { %777 = vmatprep.subr.bf16.mxu0 %v776_v25  ;;  %v682_v62 = vpack.c.bf16 %v148_v58, %v146_v57  ;;  %v168_v25 = vld [vmem:[#allocation5 + $0x390] sm:$0xff] }
  0x6c   :  { %v702_v28 = vpack.c.bf16 %v168_v25, %v166_v24 }
  0x6d   :  { %659 = vmatpush1.bf16.msra.mxu1 %v658_v6  ;;  %v154_v6 = vld [vmem:[#allocation5 + $0x320] sm:$0xff] }
  0x6e   :  { %661 = vmatprep.subr.bf16.mxu1 %v660_v7  ;;  %779 = vmatpush1.bf16.msra.mxu0 %v778_v35  ;;  %v156_v7 = vld [vmem:[#allocation5 + $0x330] sm:$0xff]  ;;  %v708_v35 = vpack.c.bf16 %v177_v33, %v175_v32 }
  0x6f   :  { %781 = vmatprep.subr.bf16.mxu0 %v780_v37  ;;  %v690_v10 = vpack.c.bf16 %v156_v7, %v154_v6  ;;  %v176_v37 = vld [vmem:[#allocation5 + $0x3d0] sm:$0xff] }
  0x71   :  { %663 = vmatpush1.bf16.msra.mxu1 %v662_v18  ;;  %473 = vmatmul.mubr.f32.vlgmr.msra.gmra.mrb[0].mxu0 %v51_v44  ;;  %v162_v18 = vld [vmem:[#allocation5 + $0x360] sm:$0xff]  ;;  %v714_v44 = vpack.c.bf16 %v180_v43, %v178_v42 }
  0x72   :  { %665 = vmatprep.subr.bf16.mxu1 %v664_v19  ;;  %783 = vmatpush1.bf16.msra.mxu0 %v782_v45  ;;  %v164_v19 = vld [vmem:[#allocation5 + $0x370] sm:$0xff]  ;;  %v49_v45 = vld [vmem:[#allocation3 + $0x10] sm:$0xff] }
  0x73   :  { %543 = vmatprep.mubr.f32.mxu0 %v853_v54  ;;  %v698_v22 = vpack.c.bf16 %v164_v19, %v162_v18 }
  0x75   :  { %667 = vmatpush1.bf16.msra.mxu1 %v666_v30  ;;  %v170_v30 = vld [vmem:[#allocation5 + $0x3a0] sm:$0xff] }
  0x76   :  { %669 = vmatprep.subr.bf16.mxu1 %v668_v31  ;;  %v172_v31 = vld [vmem:[#allocation5 + $0x3b0] sm:$0xff] }
  0x77   :  { %v706_v34 = vpack.c.bf16 %v172_v31, %v170_v30 }
  0x79   :  { %671 = vmatpush1.bf16.msra.mxu1 %v670_v40  ;;  %586 = vmatmul.mubr.msk.f32.vlgmr.msra.gmra.mrb[0].mxu0 %vm262_vm0, %v53_v59  ;;  %v710_v40 = vpack.c.bf16 %v176_v37, %v174_v36 }
  0x7a   :  { %673 = vmatprep.subr.bf16.mxu1 %v672_v41  ;;  %v712_v41 = vpack.c.bf16 %v181_v39, %v179_v38 }
  0x7d   :  { %675 = vmatpush1.bf16.msra.mxu1 %v674_v48  ;;  %v252_v48 = vlaneseq }
  0x7e   :  { %677 = vmatprep.subr.bf16.mxu1 %v676_v49 }
  0x7f   :  { %v253_v49 = vshrl.u32 %v252_v48, 7 }
  0x81   :  { %679 = vmatpush1.bf16.msra.mxu1 %v678_v55  ;;  %v254_v50 = vsub.s32 0, %v253_v49  ;;  %v258_v52 = vsub.s32 1, %v253_v49 }
  0x82   :  { %681 = vmatprep.subr.bf16.mxu1 %v680_v56  ;;  %v552_v56 = vld [vmem:[%s930_s3] sm:$0x3] }
  0x83   :  { %v255_v53 = vrot.slane %v250_v51, %v254_v50  ;;  %v259_v54 = vrot.slane %v250_v51, %v258_v52  ;;  %v557_v61 = vrot.slane %v552_v56, %v254_v50 }
  0x85   :  { %683 = vmatpush1.bf16.msra.mxu1 %v682_v62 }
  0x86   :  { %685 = vmatprep.subr.bf16.mxu1 %v684_v63  ;;  %v561_v63 = vrot.slane %v552_v56, %v258_v52 }
  0x89   :  { %687 = vmatpush1.bf16.msra.mxu1 %v686_v4 }
  0x8a   :  { %689 = vmatprep.subr.bf16.mxu1 %v688_v5  ;;  %v570_v5 = vstv %s931_s4 }
  0x8d   :  { %691 = vmatpush1.bf16.msra.mxu1 %v690_v10 }
  0x8e   :  { %693 = vmatprep.subr.bf16.mxu1 %v692_v11 }
  0x91   :  { %695 = vmatpush1.bf16.msra.mxu1 %v694_v16 }
  0x92   :  { %697 = vmatprep.subr.bf16.mxu1 %v696_v17 }
  0x95   :  { %699 = vmatpush1.bf16.msra.mxu1 %v698_v22 }
  0x96   :  { %701 = vmatprep.subr.bf16.mxu1 %v700_v23 }
  0x99   :  { %703 = vmatpush1.bf16.msra.mxu1 %v702_v28 }
  0x9a   :  { %705 = vmatprep.subr.bf16.mxu1 %v704_v29 }
  0x9d   :  { %707 = vmatpush1.bf16.msra.mxu1 %v706_v34 }
  0x9e   :  { %709 = vmatprep.subr.bf16.mxu1 %v708_v35 }
  0xa1   :  { %711 = vmatpush1.bf16.msra.mxu1 %v710_v40 }
  0xa2   :  { %713 = vmatprep.subr.bf16.mxu1 %v712_v41 }
  0xa5   :  { %715 = vmatpush1.bf16.msra.mxu1 %v714_v44 }
  0xa8   :  { %402 = vmatmul.mubr.f32.vlgmr.msra.gmra.mrb[0].mxu1 %v49_v45 }
 0x14c   :  { %v545_v46 = vpop.f32.mrb[0].mxu0 }
 0x14d   :  { %v547_v47 = vpop.f32.mrb[1].mxu0 }
 0x17b   :  { %v403_v55 = vpop.f32.mrb[0].mxu1 }
 0x17c   :  { %v784_v57 = vadd.f32 %v403_v55, %v255_v53  ;;  %v405_v58 = vpop.f32.mrb[1].mxu1 }
 0x17d   :  { %v786_v59 = vadd.f32 %v405_v58, %v259_v54 }
 0x17e   :  { %v785_v60 = vadd.f32 %v784_v57, %v545_v46 }
 0x17f   :  { %v787_v62 = vadd.f32 %v786_v59, %v547_v47 }
 0x180   :  { %v550_v0 = vmax.f32 %v785_v60, 0.0 }
 0x181   :  { %v551_v1 = vmax.f32 %v787_v62, 0.0 }
 0x182   :  { %v564_v2 = vmul.f32 %v557_v61, %v550_v0 }
 0x183   :  { %v565_v3 = vmul.f32 %v561_v63, %v551_v1 }
 0x185   :  { %v566_v4 = vadd.f32 %v565_v3, %v564_v2 }
 0x187   :  { %567 = vadd.xlane.f32.xlu0 %v566_v4 }
 0x214   :  { %v568_v6 = vpop.xlane.xlu0 %567 }
 0x215   :  { %v571_v7 = vadd.f32 %v570_v5, %v568_v6 }
 0x217   :  { %v587_v8 = vmul.f32 -1.442695, %v571_v7 }
 0x219   :  { %797 = vpow2.f32 %v587_v8 }
 0x223   :  { %v798_v9 = vpop.eup %797 }
 0x224   :  { %v575_v10 = vadd.f32 1.0, %v798_v9 }
 0x226   :  { %799 = vrcp.f32 %v575_v10 }
 0x230   :  { %v800_v11 = vpop.eup %799 }
 0x231   :  { %579 = vst.msk [vmem:[%s932_s5] sm:$0xff] %vm578_vm1, %v800_v11 }
 0x232   :  { %584 = vsyncpa [#allocation4], 1 }
 0x233   :  { %585 = vsyncpa [#allocation6], 1 }

</bundles_post_ra>
